<compile_context>
chip_gen: v6e
topology: v6e:2x2x1
jax: 0.10.0
libtpu: 0.0.40
codegen_flags: <defaults>
</compile_context>

<pallas_src>
import functools
import math

import jax
import jax.numpy as jnp
from jax.experimental import pallas as pl
from jax.experimental.pallas import tpu as pltpu


# Tile targets sized against v7x's 64 MiB physical VMEM (double-buffered inputs +
# f32 accumulator stay well under the 32 MiB scoped default). On v6e/v5e (128 MiB
# VMEM) these can be raised (e.g. TK/TN=1024) together with vmem_limit_bytes.
TM, TN, TK = 256, 512, 512
VMEM_LIMIT = 32 * 1024 * 1024


def _pick_tile(n, target, align):
    """Largest tile <= target that divides n (aligned), else full n."""
    if n <= target:
        return n
    t = (target // align) * align
    while t >= align:
        if n % t == 0:
            return t
        t -= align
    return n


# ----------------------------- Pallas kernels ------------------------------


def _gelu(x):
    # TODO(synk): timm's nn.GELU defaults to exact (erf) GELU; tanh approximation
    # is used for guaranteed Mosaic lowering of the elementwise hot path.
    c = math.sqrt(2.0 / math.pi)
    return 0.5 * x * (1.0 + jnp.tanh(c * (x + 0.044715 * x * x * x)))


def _linear_kernel(x_ref, w_ref, b_ref, r_ref, o_ref, acc_ref, *, nk, activation):
    """Tiled y = x @ w + b (+gelu) + residual, K-reduction over grid axis 2."""
    k = pl.program_id(2)

    @pl.when(k == 0)
    def _():
        acc_ref[...] = jnp.zeros_like(acc_ref)

    acc_ref[...] += jnp.dot(
        x_ref[...].astype(w_ref.dtype), w_ref[...],
        preferred_element_type=jnp.float32)

    @pl.when(k == nk - 1)
    def _():
        y = acc_ref[...] + b_ref[...]
        if activation == "gelu":
            y = _gelu(y)
        y = y + r_ref[...]
        o_ref[...] = y.astype(o_ref.dtype)


def _ln_linear_kernel(x_ref, g_ref, bln_ref, w_ref, b_ref, o_ref, *, eps):
    """Fused LayerNorm(x-tile) @ w + b  (K = full model dim, kept in VMEM)."""
    x = x_ref[...]
    mu = jnp.mean(x, axis=-1, keepdims=True)
    var = jnp.mean(jnp.square(x - mu), axis=-1, keepdims=True)
    xn = (x - mu) * jax.lax.rsqrt(var + eps) * g_ref[...] + bln_ref[...]
    y = jnp.dot(xn.astype(w_ref.dtype), w_ref[...],
                preferred_element_type=jnp.float32)
    o_ref[...] = (y + b_ref[...]).astype(o_ref.dtype)


def _mlp_kernel(x_ref, g_ref, bln_ref, w1_ref, b1_ref, w2_ref, b2_ref, r_ref,
                o_ref, xn_ref, acc_ref, *, nk, eps):
    """Fused LN -> fc1 -> GELU -> fc2 -> +residual; mlp_dim is the K grid axis."""
    k = pl.program_id(2)

    @pl.when(k == 0)
    def _():
        x = x_ref[...]
        mu = jnp.mean(x, axis=-1, keepdims=True)
        var = jnp.mean(jnp.square(x - mu), axis=-1, keepdims=True)
        xn = (x - mu) * jax.lax.rsqrt(var + eps) * g_ref[...] + bln_ref[...]
        xn_ref[...] = xn.astype(xn_ref.dtype)
        acc_ref[...] = jnp.zeros_like(acc_ref)

    h = jnp.dot(xn_ref[...], w1_ref[...], preferred_element_type=jnp.float32)
    h = _gelu(h + b1_ref[...])                     # GELU in f32
    acc_ref[...] += jnp.dot(h.astype(w2_ref.dtype), w2_ref[...],
                            preferred_element_type=jnp.float32)

    @pl.when(k == nk - 1)
    def _():
        o_ref[...] = (acc_ref[...] + b2_ref[...] + r_ref[...]).astype(o_ref.dtype)


def _attention_kernel(q_ref, k_ref, v_ref, o_ref, *, scale, hb, dh):
    """Per (batch, head-group) softmax attention; hb heads packed per block."""
    # TODO(synk): for very long token counts, tile over T (flash-style) instead of
    # holding the full (T, T) score matrix.
    for h in range(hb):
        lo, hi = h * dh, (h + 1) * dh
        q = q_ref[:, lo:hi].astype(jnp.bfloat16)
        kk = k_ref[:, lo:hi].astype(jnp.bfloat16)
        v = v_ref[:, lo:hi].astype(jnp.bfloat16)
        # q @ k^T via dot_general (no materialized transpose), f32 accumulation.
        s = jax.lax.dot_general(q, kk, (((1,), (1,)), ((), ())),
                                preferred_element_type=jnp.float32) * scale
        m = jnp.max(s, axis=-1, keepdims=True)
        p = jnp.exp(s - m)
        denom = jnp.sum(p, axis=-1, keepdims=True)
        p = p * pl.reciprocal(denom, approx=True)
        o = jnp.dot(p.astype(jnp.bfloat16), v, preferred_element_type=jnp.float32)
        o_ref[:, lo:hi] = o.astype(o_ref.dtype)


# ----------------------------- Kernel wrappers ------------------------------


def pallas_linear(x, w, b, residual, *, activation=None, out_dtype=jnp.float32):
    """y = x @ w + b (+gelu) + residual. residual rows may be M or a divisor of M
    (row-periodic broadcast, e.g. pos_embed over the batch)."""
    M, K = x.shape
    Kw, N = w.shape
    assert K == Kw
    R, Nr = residual.shape
    assert M % R == 0 and Nr == N

    tm = _pick_tile(R, TM, 16)
    tn = _pick_tile(N, TN, 128)
    tk = _pick_tile(K, TK, 128)
    nk = K // tk
    r_blocks = R // tm
    b2 = b.reshape(1, N).astype(jnp.float32)

    return pl.pallas_call(
        functools.partial(_linear_kernel, nk=nk, activation=activation),
        grid=(M // tm, N // tn, nk),
        in_specs=[
            pl.BlockSpec((tm, tk), lambda i, j, k: (i, k)),
            pl.BlockSpec((tk, tn), lambda i, j, k: (k, j)),
            pl.BlockSpec((1, tn), lambda i, j, k: (0, j)),
            pl.BlockSpec((tm, tn), lambda i, j, k: (i % r_blocks, j)),
        ],
        out_specs=pl.BlockSpec((tm, tn), lambda i, j, k: (i, j)),
        out_shape=jax.ShapeDtypeStruct((M, N), out_dtype),
        scratch_shapes=[pltpu.VMEM((tm, tn), jnp.float32)],
        compiler_params=pltpu.CompilerParams(
            dimension_semantics=("parallel", "parallel", "arbitrary"),
            vmem_limit_bytes=VMEM_LIMIT,
        ),
    )(x, w, b2, residual)


def pallas_ln_linear(x, gamma, beta, w, b, *, eps=1e-6, out_dtype=jnp.float32):
    """y = LayerNorm(x) @ w + b, LN fused into the matmul kernel."""
    M, D = x.shape
    Dw, N = w.shape
    assert D == Dw
    tm = _pick_tile(M, TM, 16)
    tn = _pick_tile(N, TN, 128)
    g2 = gamma.reshape(1, D).astype(jnp.float32)
    bl2 = beta.reshape(1, D).astype(jnp.float32)
    b2 = b.reshape(1, N).astype(jnp.float32)

    return pl.pallas_call(
        functools.partial(_ln_linear_kernel, eps=eps),
        grid=(M // tm, N // tn),
        in_specs=[
            pl.BlockSpec((tm, D), lambda i, j: (i, 0)),
            pl.BlockSpec((1, D), lambda i, j: (0, 0)),
            pl.BlockSpec((1, D), lambda i, j: (0, 0)),
            pl.BlockSpec((D, tn), lambda i, j: (0, j)),
            pl.BlockSpec((1, tn), lambda i, j: (0, j)),
        ],
        out_specs=pl.BlockSpec((tm, tn), lambda i, j: (i, j)),
        out_shape=jax.ShapeDtypeStruct((M, N), out_dtype),
        compiler_params=pltpu.CompilerParams(
            dimension_semantics=("parallel", "parallel"),
            vmem_limit_bytes=VMEM_LIMIT,
        ),
    )(x, g2, bl2, w, b2)


def pallas_mlp(x, gamma, beta, w1, b1, w2, b2, *, eps=1e-6):
    """y = x + fc2(gelu(fc1(LN(x)))) as one kernel; mlp_dim is the K grid axis."""
    M, D = x.shape
    Dw, Hm = w1.shape
    assert D == Dw and w2.shape == (Hm, D)
    tm = _pick_tile(M, TM, 16)
    tn = _pick_tile(D, TN, 128)
    tk = _pick_tile(Hm, TK, 128)
    nk = Hm // tk
    g2 = gamma.reshape(1, D).astype(jnp.float32)
    bl2 = beta.reshape(1, D).astype(jnp.float32)
    b1r = b1.reshape(1, Hm).astype(jnp.float32)
    b2r = b2.reshape(1, D).astype(jnp.float32)

    return pl.pallas_call(
        functools.partial(_mlp_kernel, nk=nk, eps=eps),
        grid=(M // tm, D // tn, nk),
        in_specs=[
            pl.BlockSpec((tm, D), lambda i, j, k: (i, 0)),   # x (for LN)
            pl.BlockSpec((1, D), lambda i, j, k: (0, 0)),    # ln gamma
            pl.BlockSpec((1, D), lambda i, j, k: (0, 0)),    # ln beta
            pl.BlockSpec((D, tk), lambda i, j, k: (0, k)),   # fc1 weight slice
            pl.BlockSpec((1, tk), lambda i, j, k: (0, k)),   # fc1 bias slice
            pl.BlockSpec((tk, tn), lambda i, j, k: (k, j)),  # fc2 weight slice
            pl.BlockSpec((1, tn), lambda i, j, k: (0, j)),   # fc2 bias slice
            pl.BlockSpec((tm, tn), lambda i, j, k: (i, j)),  # residual (= x tile)
        ],
        out_specs=pl.BlockSpec((tm, tn), lambda i, j, k: (i, j)),
        out_shape=jax.ShapeDtypeStruct((M, D), jnp.float32),
        scratch_shapes=[
            pltpu.VMEM((tm, D), jnp.bfloat16),   # normalized x (MXU operand)
            pltpu.VMEM((tm, tn), jnp.float32),   # fc2 accumulator
        ],
        compiler_params=pltpu.CompilerParams(
            dimension_semantics=("parallel", "parallel", "arbitrary"),
            vmem_limit_bytes=VMEM_LIMIT,
        ),
    )(x, g2, bl2, w1, b1r, w2, b2r, x)


def pallas_attention(qkv, *, B, T, heads, head_dim, scale, out_dtype=jnp.bfloat16):
    """Multi-head attention reading q/k/v straight out of the (B*T, 3D) qkv matrix
    and writing a (B*T, D) output at each head's column offset."""
    D = heads * head_dim
    assert qkv.shape == (B * T, 3 * D)

    # Pack heads so the block lane width is a multiple of 128 (lane-dense).
    hb = 1
    if head_dim % 128 != 0:
        hb = heads
        for cand in range(1, heads + 1):
            if heads % cand == 0 and (cand * head_dim) % 128 == 0:
                hb = cand
                break
    hg = heads // hb          # head groups (grid axis 1)
    bw = hb * head_dim        # block lane width

    q_spec = pl.BlockSpec((T, bw), lambda b, g: (b, g))
    k_spec = pl.BlockSpec((T, bw), lambda b, g: (b, hg + g))
    v_spec = pl.BlockSpec((T, bw), lambda b, g: (b, 2 * hg + g))

    return pl.pallas_call(
        functools.partial(_attention_kernel, scale=scale, hb=hb, dh=head_dim),
        grid=(B, hg),
        in_specs=[q_spec, k_spec, v_spec],
        out_specs=pl.BlockSpec((T, bw), lambda b, g: (b, g)),
        out_shape=jax.ShapeDtypeStruct((B * T, D), out_dtype),
        compiler_params=pltpu.CompilerParams(
            dimension_semantics=("parallel", "parallel"),
            vmem_limit_bytes=VMEM_LIMIT,
        ),
    )(qkv, qkv, qkv)


# ------------------------------- Model glue --------------------------------


def center_padding(images, p):
    _, _, h, w = images.shape
    ph = (p - h % p) % p
    pw = (p - w % p) % p
    pad = ((0, 0), (0, 0), (ph // 2, ph - ph // 2), (pw // 2, pw - pw // 2))
    return jnp.pad(images, pad)


def init_params(key, *, in_chans, patch, dim, depth, mlp_dim, tokens):
    keys = jax.random.split(key, 4 + depth)

    def normal_bf16(k, shape, std=0.02):
        # Weights stored in bf16 (MXU operand dtype); accumulation stays f32.
        return (std * jax.random.normal(k, shape, jnp.float32)).astype(jnp.bfloat16)

    params = {
        # Conv2d weight (D, C, p, p) flattened with (C, kh, kw) order, stored
        # pre-transposed as (C*p*p, D) for the matmul kernel.
        "patch_w": normal_bf16(keys[0], (in_chans * patch * patch, dim)),
        "patch_b": jnp.zeros((dim,), jnp.float32),
        # TODO(synk): resample_abs_pos_embed (bicubic pos-embed resize) not
        # implemented; pos_embed is built directly at the target grid size.
        "pos_embed": 0.02 * jax.random.normal(keys[1], (tokens, dim), jnp.float32),
        "blocks": [],
    }
    for d in range(depth):
        bk = jax.random.split(keys[4 + d], 4)
        params["blocks"].append(
            {
                "ln1_g": jnp.ones((dim,), jnp.float32),
                "ln1_b": jnp.zeros((dim,), jnp.float32),
                "qkv_w": normal_bf16(bk[0], (dim, 3 * dim)),
                "qkv_b": jnp.zeros((3 * dim,), jnp.float32),
                "proj_w": normal_bf16(bk[1], (dim, dim)),
                "proj_b": jnp.zeros((dim,), jnp.float32),
                "ln2_g": jnp.ones((dim,), jnp.float32),
                "ln2_b": jnp.zeros((dim,), jnp.float32),
                "fc1_w": normal_bf16(bk[2], (dim, mlp_dim)),
                "fc1_b": jnp.zeros((mlp_dim,), jnp.float32),
                "fc2_w": normal_bf16(bk[3], (mlp_dim, dim)),
                "fc2_b": jnp.zeros((dim,), jnp.float32),
            }
        )
    return params


def siglip_forward(params, images, *, patch, dim, heads):
    images = center_padding(images, patch)
    B, C, H, W = images.shape
    assert H % patch == 0 and W % patch == 0
    oh, ow = H // patch, W // patch
    T = oh * ow

    # patch_embed: Conv2d(kernel=stride=patch) == unfold into patches + matmul.
    # TODO(synk): the unfold itself is a pure data rearrangement done in XLA.
    x_p = images.reshape(B, C, oh, patch, ow, patch)
    x_p = x_p.transpose(0, 2, 4, 1, 3, 5).reshape(B * T, C * patch * patch)
    # The kernel feeds the MXU in bf16 anyway -> ship the unfold as bf16 (half DMA).
    x_p = x_p.astype(jnp.bfloat16)
    # _pos_embed (no class token for SigLIP) fused as the row-periodic residual
    # of the patch-embed matmul (no B-times tiled copy in HBM).
    x = pallas_linear(x_p, params["patch_w"], params["patch_b"], params["pos_embed"])

    # patch_drop / norm_pre are Identity in this config.
    head_dim = dim // heads
    scale = head_dim ** -0.5

    for blk in params["blocks"]:
        # --- attention sub-block: x = x + proj(attn(LN(x))) ---
        # qkv and the attention output are pure MXU operands downstream -> keep
        # them bf16 in HBM (their consumers cast to bf16 regardless).
        qkv = pallas_ln_linear(x, blk["ln1_g"], blk["ln1_b"],
                               blk["qkv_w"], blk["qkv_b"], out_dtype=jnp.bfloat16)
        a = pallas_attention(qkv, B=B, T=T, heads=heads, head_dim=head_dim,
                             scale=scale, out_dtype=jnp.bfloat16)
        x = pallas_linear(a, blk["proj_w"], blk["proj_b"], x)

        # --- MLP sub-block (fully fused): x = x + fc2(gelu(fc1(LN(x)))) ---
        x = pallas_mlp(x, blk["ln2_g"], blk["ln2_b"],
                       blk["fc1_w"], blk["fc1_b"], blk["fc2_w"], blk["fc2_b"])

    # tokens_to_output('dense'): "b (h w) c -> b c h w"
    out = x.reshape(B, oh, ow, dim).transpose(0, 3, 1, 2)
    return out


# ---------------------------------- Main ------------------------------------


if __name__ == "__main__":
    # Small but tile-aligned shapes: head_dim is a multiple of 128 so the
    # attention blocks are lane-dense; dim/mlp_dim are multiples of 128.
    B, C, H, W = 2, 3, 16, 16
    patch = 4
    heads = 2
    head_dim = 128
    dim = heads * head_dim        # 256
    depth = 2
    mlp_dim = 4 * dim             # 1024
    tokens = (H // patch) * (W // patch)  # 16

    key = jax.random.PRNGKey(0)
    k_img, k_params = jax.random.split(key)
    images = jax.random.normal(k_img, (B, C, H, W), jnp.float32)
    params = init_params(
        k_params, in_chans=C, patch=patch, dim=dim, depth=depth,
        mlp_dim=mlp_dim, tokens=tokens,
    )

    out = siglip_forward(params, images, patch=patch, dim=dim, heads=heads)
    out = jax.block_until_ready(out)

    assert out.shape == (B, dim, H // patch, W // patch), out.shape
    assert out.dtype == jnp.float32
    assert bool(jnp.all(jnp.isfinite(out)))
    print("KERNEL_OK")
</pallas_src>

<mosaic_0001>
module attributes {stable_mosaic.version = 11 : i64} {
  func.func @_linear_kernel(%arg0: i32, %arg1: i32, %arg2: i32, %arg3: memref<16x48xbf16, #tpu.memory_space<vmem>>, %arg4: memref<48x256xbf16, #tpu.memory_space<vmem>>, %arg5: memref<1x256xf32, #tpu.memory_space<vmem>>, %arg6: memref<16x256xf32, #tpu.memory_space<vmem>>, %arg7: memref<16x256xf32, #tpu.memory_space<vmem>>, %arg8: memref<16x256xf32, #tpu.memory_space<vmem>>) attributes {dimension_semantics = [#tpu.dimension_semantics<parallel>, #tpu.dimension_semantics<parallel>, #tpu.dimension_semantics<arbitrary>], iteration_bounds = array<i64: 2, 1, 1>, scalar_prefetch = 0 : i64, scratch_operands = 1 : i64, tpu.core_type = #tpu.core_type<tc>, window_params = [{transform_indices = @transform_0, window_bounds = array<i64: 16, 48>}, {transform_indices = @transform_1, window_bounds = array<i64: 48, 256>}, {transform_indices = @transform_2, window_bounds = array<i64: 1, 256>}, {transform_indices = @transform_3, window_bounds = array<i64: 16, 256>}, {transform_indices = @transform_4, window_bounds = array<i64: 16, 256>}]} {
    %c0_i32 = arith.constant 0 : i32
    %0 = arith.cmpi eq, %arg2, %c0_i32 : i32
    %1 = arith.extui %0 : i1 to i32
    %c0_i32_0 = arith.constant 0 : i32
    %2 = arith.cmpi ne, %1, %c0_i32_0 : i32
    scf.if %2 {
      %cst_10 = arith.constant 0.000000e+00 : f32
      %12 = vector.broadcast %cst_10 : f32 to vector<16x256xf32>
      %c0_11 = arith.constant 0 : index
      %c0_12 = arith.constant 0 : index
      %13 = vector.load %arg8[%c0_11, %c0_12] : memref<16x256xf32, #tpu.memory_space<vmem>>, vector<16x256xf32>
      tpu.vector_store %arg8[%c0_11, %c0_12], %12 {strides = array<i32>} : memref<16x256xf32, #tpu.memory_space<vmem>>, vector<16x256xf32>,
    } else {
    }
    %c0 = arith.constant 0 : index
    %c0_1 = arith.constant 0 : index
    %3 = vector.load %arg8[%c0, %c0_1] : memref<16x256xf32, #tpu.memory_space<vmem>>, vector<16x256xf32>
    %c0_2 = arith.constant 0 : index
    %c0_3 = arith.constant 0 : index
    %4 = vector.load %arg3[%c0_2, %c0_3] : memref<16x48xbf16, #tpu.memory_space<vmem>>, vector<16x48xbf16>
    %c0_4 = arith.constant 0 : index
    %c0_5 = arith.constant 0 : index
    %5 = vector.load %arg4[%c0_4, %c0_5] : memref<48x256xbf16, #tpu.memory_space<vmem>>, vector<48x256xbf16>
    %cst = arith.constant dense<0.000000e+00> : vector<16x256xf32>
    %6 = tpu.matmul %4, %5, %cst {dimension_numbers = #tpu.dot_dimension_numbers<[1], [0], [0], [1], [0, 0, 1, 1], [], []>} : vector<16x48xbf16>, vector<48x256xbf16>, vector<16x256xf32> -> vector<16x256xf32>
    %7 = arith.addf %3, %6 : vector<16x256xf32>
    %c0_6 = arith.constant 0 : index
    %c0_7 = arith.constant 0 : index
    %8 = vector.load %arg8[%c0_6, %c0_7] : memref<16x256xf32, #tpu.memory_space<vmem>>, vector<16x256xf32>
    tpu.vector_store %arg8[%c0_6, %c0_7], %7 {strides = array<i32>} : memref<16x256xf32, #tpu.memory_space<vmem>>, vector<16x256xf32>,
    %c0_i32_8 = arith.constant 0 : i32
    %9 = arith.cmpi eq, %arg2, %c0_i32_8 : i32
    %10 = arith.extui %9 : i1 to i32
    %c0_i32_9 = arith.constant 0 : i32
    %11 = arith.cmpi ne, %10, %c0_i32_9 : i32
    scf.if %11 {
      %c0_10 = arith.constant 0 : index
      %c0_11 = arith.constant 0 : index
      %12 = vector.load %arg8[%c0_10, %c0_11] : memref<16x256xf32, #tpu.memory_space<vmem>>, vector<16x256xf32>
      %c0_12 = arith.constant 0 : index
      %c0_13 = arith.constant 0 : index
      %13 = vector.load %arg5[%c0_12, %c0_13] : memref<1x256xf32, #tpu.memory_space<vmem>>, vector<1x256xf32>
      %14 = vector.broadcast %13 : vector<1x256xf32> to vector<16x256xf32>
      %15 = arith.addf %12, %14 : vector<16x256xf32>
      %c0_14 = arith.constant 0 : index
      %c0_15 = arith.constant 0 : index
      %16 = vector.load %arg6[%c0_14, %c0_15] : memref<16x256xf32, #tpu.memory_space<vmem>>, vector<16x256xf32>
      %17 = arith.addf %15, %16 : vector<16x256xf32>
      %c0_16 = arith.constant 0 : index
      %c0_17 = arith.constant 0 : index
      %18 = vector.load %arg7[%c0_16, %c0_17] : memref<16x256xf32, #tpu.memory_space<vmem>>, vector<16x256xf32>
      tpu.vector_store %arg7[%c0_16, %c0_17], %17 {strides = array<i32>} : memref<16x256xf32, #tpu.memory_space<vmem>>, vector<16x256xf32>,
    } else {
    }
    return
  }
  func.func @transform_0(%arg0: i32, %arg1: i32, %arg2: i32) -> (i32, i32) {
    %c0_i32 = arith.constant 0 : i32
    return %arg0, %arg2 : i32, i32
  }
  func.func @transform_1(%arg0: i32, %arg1: i32, %arg2: i32) -> (i32, i32) {
    %c0_i32 = arith.constant 0 : i32
    return %arg2, %arg1 : i32, i32
  }
  func.func @transform_2(%arg0: i32, %arg1: i32, %arg2: i32) -> (i32, i32) {
    %c0_i32 = arith.constant 0 : i32
    %c0_i32_0 = arith.constant 0 : i32
    return %c0_i32, %arg1 : i32, i32
  }
  func.func @transform_3(%arg0: i32, %arg1: i32, %arg2: i32) -> (i32, i32) {
    %c1_i32 = arith.constant 1 : i32
    %c0_i32 = arith.constant 0 : i32
    %0 = arith.cmpi eq, %c1_i32, %c0_i32 : i32
    %c1_i32_0 = arith.constant 1 : i32
    %1 = arith.select %0, %c1_i32_0, %c1_i32 : i32
    %2 = arith.remsi %arg0, %1 : i32
    %c0_i32_1 = arith.constant 0 : i32
    %3 = arith.cmpi ne, %2, %c0_i32_1 : i32
    %c0_i32_2 = arith.constant 0 : i32
    %4 = arith.cmpi slt, %2, %c0_i32_2 : i32
    %c0_i32_3 = arith.constant 0 : i32
    %5 = arith.cmpi slt, %1, %c0_i32_3 : i32
    %6 = arith.xori %4, %5 : i1
    %7 = arith.andi %6, %3 : i1
    %8 = arith.addi %2, %1 : i32
    %9 = arith.select %7, %8, %2 : i32
    %c0_i32_4 = arith.constant 0 : i32
    return %9, %arg1 : i32, i32
  }
  func.func @transform_4(%arg0: i32, %arg1: i32, %arg2: i32) -> (i32, i32) {
    %c0_i32 = arith.constant 0 : i32
    return %arg0, %arg1 : i32, i32
  }
}

</mosaic_0001>

<bundles_post_ra>
// kernel: tpu_custom_call.1
= control target key start
LH: loop header
LB: loop body
LE: loop exit
PB: predicated region body
PF: predicated region fallthrough
CT: control target
= control target key end

     0   :  { %9 = vsyncpa [#allocation4], 0  ;;  %s1135_s0 = inlined_call_operand.hbm [shape: bf16[32,48], index: 0, kind: input, shape index: {}]   ;;  %s1136_s1 = inlined_call_operand.hbm [shape: bf16[48,256], index: 1, kind: input, shape index: {}]   ;;  %s1137_s2 = inlined_call_operand.vmem [shape: f32[1,256], index: 2, kind: input, shape index: {}]   ;;  %s1138_s3 = inlined_call_operand.hbm [shape: f32[16,256], index: 3, kind: input, shape index: {}]   ;;  %s1139_s4 = inlined_call_operand.hbm [shape: f32[32,256], index: 4, kind: output, shape index: {}]  }
   0x1   :  { %11 = vsyncpa [#allocation4 + $0x1], 0 }
   0x2   :  { %12 = vsyncpa [#allocation7], 0 }
   0x3   :  { %13 = vsyncpa [#allocation5], 0 }
   0x4   :  { %15 = vsyncpa [#allocation5 + $0x1], 0  ;;  %s943_s15 = smov 0   ;;  %s945_s16 = smov 0  }
   0x5   :  { %s947_s17 = smov 0   ;;  %s949_s18 = smov 0  }
   0x6   :  { %s951_s19 = smov 0   ;;  %s953_s20 = smov 0  }
   0x7 LB: > { %s605_s21 = sadd.s32 4294967295, %s903_s20   ;;  %s606_s22 = sadd.s32 4294967294, %s903_s20   ;;  %s903_s20 = sphi %s953_s20, %s21_s20   ;;  %s899_s19 = sphi %s951_s19, %s1159_s19   ;;  %s895_s18 = sphi %s949_s18, %s1158_s18   ;;  %s891_s17 = sphi %s947_s17, %s1157_s17   ;;  %s887_s16 = sphi %s945_s16, %s1156_s16   ;;  %s883_s15 = sphi %s943_s15, %s1155_s15  }
   0x8   : > { %p62_p0 = scmp.ne.s32.totalorder %s887_s16, %s883_s15  ;;  %p977_p1 = scmp.eq.s32.totalorder %s605_s21, 0 }
   0x9   : > { %p981_p2 = scmp.eq.s32.totalorder %s605_s21, 1  ;;  %p174_p3 = scmp.eq.s32.totalorder %s606_s22, 1 }
   0xa   : > { %s1143_s23 = scalar_select %p977_p1, 1, 0 }
   0xb   : > { %p987_p4 = por %p977_p1, %p62_p0  ;;  %p607_p5 = scmp.ge.s32.totalorder %s903_s20, 1 }
   0xc   : > { %p992_p6 = por %p174_p3, %p62_p0  ;;  %p181_p7 = scmp.lt.s32.totalorder %s903_s20, 3 }
   0xd   : > { %s1145_s25 = scalar_select %p987_p4, 1, 0 }
   0xe   : > { %s1146_s26 = scalar_select %p992_p6, 1, 0 }
   0xf   : > { %p997_p8 = pnand %p607_p5, %p181_p7  ;;  %s905_s28 = smov [#allocation6]  }
  0x10   : > { %s199_s29 = sshll.u32 %s905_s28, 4  ;;  %s906_s5 = smov [#allocation8]   ;;  %s200_s29 = int_to_ptr.vmem [resolvable:$true] %s199_s29 }
  0x11   : > { %p649_p9 = pneg %p997_p8  ;;  %s223_s6 = sshll.u32 %s906_s5, 4  ;;  %s224_s6 = int_to_ptr.vmem [resolvable:$true] %s223_s6 }
  0x12   : > { %s750_s7 = scalar_lea.vmem %s200_s29, 768  ;;  %p758_p5 = scmp.lt.s32.totalorder %s200_s29, %s200_s29 }
  0x13   : > { %p1006_p11 = pnand %p649_p9, %p977_p1  ;;  %p751_p13 = scmp.ne.s32.totalorder %s200_s29, %s750_s7 }
  0x14   : > { %p759_p7 = scmp.lt.s32.totalorder %s750_s7, %s750_s7 }
  0x15   : > { %p741_p12 = pneg %p1006_p11 }
  0x16   : > { %p760_p10 = por %p759_p7, %p758_p5 }
  0x17   : > { %p753_p0 = pnand %p751_p13, %p741_p12 }
  0x19   : > { %p754_p3 = pneg %p753_p0 }
  0x1b   : > { %p761_p9 = pnand %p760_p10, %p754_p3 }
  0x1d   : > { %764 = shalt.err (!%p761_p9)
}
  0x1e   : > { %s907_s8 = smov 128   ;;  %s908_s9 = smov 8  }
  0x1f   : > { %652 = dma.hbm_to_vmem [thread:$0]  (!%p1006_p11), %s1136_s1, 768, %s200_s29, [#allocation7], %s907_s8, %s907_s8, %s908_s9  }
  0x20   : > { %s776_s12 = scalar_lea.vmem %s224_s6, 512  ;;  %p784_p1 = scmp.lt.s32.totalorder %s224_s6, %s224_s6 }
  0x21   : > { %p777_p6 = scmp.ne.s32.totalorder %s224_s6, %s776_s12  ;;  %p785_p4 = scmp.lt.s32.totalorder %s776_s12, %s776_s12 }
  0x23   : > { %p779_p13 = pnand %p777_p6, %p741_p12  ;;  %p786_p5 = por %p785_p4, %p784_p1 }
  0x25   : > { %p780_p0 = pneg %p779_p13 }
  0x27   : > { %p787_p10 = pnand %p786_p5, %p780_p0 }
  0x29   : > { %790 = shalt.err (!%p787_p10)
}
  0x2a   : > { %s909_s13 = smov 256   ;;  %s910_s14 = smov 16  }
  0x2b   : > { %655 = dma.hbm_to_vmem [thread:$0]  (!%p1006_p11), %s1138_s3, 512, %s224_s6, [#allocation7], %s909_s13, %s909_s13, %s910_s14  }
  0x2c   : > { %s40_s28 = sadd.s32 1, %s899_s19  ;;  %s49_s29 = sadd.s32 1, %s891_s17 }
  0x2d   : > { %p42_p1 = scmp.ge.s32.totalorder %s40_s28, 2  ;;  %p56_p4 = scmp.ne.s32.totalorder %s891_s17, %s887_s16 }
  0x2e   : > { %p57_p6 = scmp.eq.s32.totalorder %s903_s20, 0  ;;  %p666_p12 = scmp.lt.s32.totalorder %s903_s20, 2 }
  0x2f   : > { %s1161_s28 = smov (%p42_p1, %s40_s28), 0  ;;  %p1038_p7 = por %p981_p2, %p56_p4 }
  0x30   : > { %p58_p3 = por %p57_p6, %p56_p4  ;;  %s44_s30 = ssub.s32 %s899_s19, %s1161_s28 }
  0x31   : > { %s237_s7 = sand.u32 1, %s891_s17   ;;  %p47_p9 = scmp.eq.s32.totalorder %s44_s30, 0 }
  0x32   : > { %s612_s6 = sshll.u32 %s237_s7, 3  ;;  %s634_s8 = sshll.u32 %s899_s19, 7 }
  0x33   : > { %s1047_s9 = scalar_select %p47_p9, %s891_s17, %s49_s29  }
  0x34   : > { %s248_s12 = scalar_lea.hbm %s1135_s0, %s634_s8  ;;  %s241_s13 = scalar_lea.vmem [#allocation3], %s612_s6 }
  0x35   : > { %s249_s14 = sshll.u32 %s241_s13, 4  ;;  %p1054_p11 = pnand %p666_p12, %p58_p3  ;;  %s250_s14 = int_to_ptr.vmem [resolvable:$true] %s249_s14 }
  0x36   : > { %s238_s21 = scalar_lea.sflag [#allocation4], %s237_s7  ;;  %s804_s22 = scalar_lea.vmem %s250_s14, 128 }
  0x37   : > { %p793_p2 = pneg %p1054_p11  ;;  %p805_p13 = scmp.ne.s32.totalorder %s250_s14, %s804_s22 }
  0x38   : > { %s911_s29 = smov [#allocation3]  }
  0x39   : > { %p807_p0 = pnand %p805_p13, %p793_p2  ;;  %s809_s30 = sshll.u32 %s911_s29, 4  ;;  %s810_s30 = int_to_ptr.vmem [resolvable:$false] %s809_s30 }
  0x3a   : > { %s811_s8 = scalar_lea.vmem %s810_s30, 256  ;;  %p812_p10 = scmp.lt.s32.totalorder %s250_s14, %s810_s30 }
  0x3b   : > { %p808_p5 = pneg %p807_p0  ;;  %p813_p1 = scmp.lt.s32.totalorder %s811_s8, %s804_s22 }
  0x3d   : > { %p814_p4 = por %p813_p1, %p812_p10 }
  0x3f   : > { %p815_p6 = pnand %p814_p4, %p808_p5 }
  0x41   : > { %818 = shalt.err (!%p815_p6)
}
  0x42   : > { %s912_s6 = smov 64   ;;  %s913_s10 = smov 4  }
  0x43   : > { %659 = dma.hbm_to_vmem [thread:$0]  (!%p1054_p11), %s248_s12, 128, %s250_s14, %s238_s21, %s912_s6, %s912_s6, %s913_s10  }
  0x44   : > { %261 = sbr.rel (%p997_p8) target bundleno = 307 (0x133), region = 36  ;;  %s1065_s7 = sand.u32 (!%p997_p8), 1, %s887_s16  }
  0x45   : > { %s616_s11 = sshll.u32 (!%p997_p8), %s1065_s7, 3  ;;  %s264_s13 = scalar_lea.sflag (!%p997_p8), [#allocation4], %s1065_s7 }
  0x46   : > { %s267_s22 = scalar_lea.vmem (!%p997_p8), [#allocation3], %s616_s11  ;;  %p1151_p12 = scmp.ne.s32.totalorder (!%p997_p8), %s1145_s25, 0 }
  0x49   : > { %870 = dma.done.wait (%p1151_p12), %s264_s13, 128  }
  0x4a   : > { %872 = vsyncadd (%p1151_p12), %s264_s13, 4294967168  ;;  %p1152_p3 = scmp.ne.s32.totalorder %s1143_s23, 0 }
  0x4c   : > { %874 = dma.done.wait (%p1152_p3), [#allocation7], 1280  }
  0x4d   : > { %876 = vsyncadd (%p1152_p3), [#allocation7], 4294966016  ;;  %v914_v0 = vmov 0   ;;  %v729_v1 = vld [vmem:[#allocation6 + $0x24] ss:$8 sps:$4 sm:$0xff]   ;;  %v738_v7 = vld [vmem:[%s267_s22] sm:$0xff]   ;;  %v435_v8 = vlaneseq }
  0x4e   : > { %407 = vmatprep.mubr.bf16.mxu0 %v914_v0  ;;  %v731_v2 = vld [vmem:[#allocation6 + $0x20] ss:$8 sps:$4 sm:$0xff]   ;;  %385 = vmatprep.subr.bf16.mxu0 %v729_v1  ;;  %v732_v3 = vld [vmem:[#allocation6 + $0x14] ss:$8 sps:$4 sm:$0xff]   ;;  %v734_v4 = vld [vmem:[#allocation6 + $0x10] ss:$8 sps:$4 sm:$0xff]  }
  0x4f   : > { %386 = vmatpush1.bf16.msra.mxu0 %v731_v2  ;;  %v735_v5 = vld [vmem:[#allocation6 + $0x4] ss:$8 sps:$4 sm:$0xff]   ;;  %v737_v6 = vld [vmem:[#allocation6] ss:$8 sps:$4 sm:$0xff]   ;;  %vm371_vm0 = vcmask 392192   ;;  %v436_v9 = vshrl.u32 %v435_v8, 7 }
  0x50   : > { %387 = vmatprep.subr.bf16.mxu0 %v732_v3  ;;  %v433_v11 = vld [vmem:[%s1137_s2] sm:$0x3]  ;;  %s619_s27 = sshll.u32 %s1065_s7, 5  ;;  %v450_v19 = vld [vmem:[#allocation8 + $0x8] sm:$0xff]  ;;  %v451_v23 = vld [vmem:[#allocation8 + $0x10] sm:$0xff]  ;;  %s636_s24 = sshll.u32 %s895_s18, 9 }
  0x51   : > { %v437_v10 = vsub.s32 0, %v436_v9  ;;  %v441_v12 = vsub.s32 1, %v436_v9  ;;  %v449_v16 = vld [vmem:[#allocation8] sm:$0xff]  ;;  %s303_s12 = scalar_lea.vmem [#allocation9], %s619_s27  ;;  %v452_v27 = vld [vmem:[#allocation8 + $0x18] sm:$0xff]  ;;  %s1087_s30 = scalar_lea.hbm %s1139_s4, %s636_s24 }
  0x52   : > { %s478_s14 = sshll.u32 %s303_s12, 4  ;;  %s462_s8 = scalar_lea.sflag [#allocation5], %s1065_s7  ;;  %s1082_s14 = int_to_ptr.vmem [resolvable:$true] %s478_s14 }
  0x53   : > { %388 = vmatpush1.bf16.msra.mxu0 %v734_v4  ;;  %v438_v13 = vrot.slane %v433_v11, %v437_v10  ;;  %v442_v14 = vrot.slane %v433_v11, %v441_v12  ;;  %s819_s18 = scalar_lea.vmem %s1082_s14, 512  ;;  %s915_s6 = smov [#allocation9]  }
  0x54   : > { %389 = vmatprep.subr.bf16.mxu0 %v735_v5  ;;  %p820_p8 = scmp.ne.s32.totalorder %s1082_s14, %s819_s18  ;;  %s823_s10 = sshll.u32 %s915_s6, 4  ;;  %s824_s10 = int_to_ptr.vmem [resolvable:$false] %s823_s10 }
  0x55   : > { %s825_s11 = scalar_lea.vmem %s824_s10, 1024  ;;  %p826_p2 = scmp.lt.s32.totalorder %s1082_s14, %s824_s10 }
  0x56   : > { %p821_p9 = pnand %p820_p8, %p1038_p7  ;;  %p827_p13 = scmp.lt.s32.totalorder %s825_s11, %s819_s18 }
  0x57   : > { %390 = vmatpush1.bf16.msra.mxu0 %v737_v6 }
  0x58   : > { %p822_p11 = pneg %p821_p9  ;;  %p828_p0 = por %p827_p13, %p826_p2 }
  0x5a   : > { %627 = vmatmul.mubr.msk.bf16.vlgmr.msra.gmra.mxu0 %vm371_vm0, %v738_v7  ;;  %p829_p5 = pnand %p828_p0, %p822_p11 }
 0x11a   : > { %v409_v15 = vpop.f32.mrf.mxu0 }
 0x11b   : > { %v445_v17 = vadd.f32 %v438_v13, %v409_v15 }
 0x11c   : > { %v411_v18 = vpop.f32.mrf.mxu0 }
 0x11d   : > { %v453_v20 = vadd.f32 %v449_v16, %v445_v17  ;;  %v446_v21 = vadd.f32 %v442_v14, %v411_v18 }
 0x11e   : > { %v413_v22 = vpop.f32.mrf.mxu0 }
 0x11f   : > { %457 = vst [vmem:[%s303_s12] sm:$0xff] %v453_v20  ;;  %v454_v24 = vadd.f32 %v450_v19, %v446_v21  ;;  %v447_v25 = vadd.f32 %v438_v13, %v413_v22 }
 0x120   : > { %v415_v26 = vpop.f32.mrf.mxu0 }
 0x121   : > { %458 = vst [vmem:[%s303_s12 + $0x8] sm:$0xff] %v454_v24  ;;  %v455_v28 = vadd.f32 %v451_v23, %v447_v25  ;;  %v448_v29 = vadd.f32 %v442_v14, %v415_v26 }
 0x123   : > { %459 = vst [vmem:[%s303_s12 + $0x10] sm:$0xff] %v455_v28  ;;  %v456_v30 = vadd.f32 %v452_v27, %v448_v29 }
 0x125   : > { %460 = vst [vmem:[%s303_s12 + $0x18] sm:$0xff] %v456_v30 }
 0x126   : > { %832 = shalt.err (!%p829_p5)
}
 0x127   : > { %s833_s13 = scalar_lea.hbm %s1087_s30, 512  ;;  %s837_s25 = scalar_lea.hbm %s1139_s4, 1024 }
 0x128   : > { %p834_p10 = scmp.ne.s32.totalorder %s1087_s30, %s833_s13  ;;  %p838_p6 = scmp.lt.s32.totalorder %s1087_s30, %s1139_s4 }
 0x129   : > { %p839_p12 = scmp.lt.s32.totalorder %s837_s25, %s833_s13 }
 0x12a   : > { %p835_p1 = pnand %p834_p10, %p1038_p7 }
 0x12b   : > { %p840_p3 = por %p839_p12, %p838_p6 }
 0x12c   : > { %p836_p4 = pneg %p835_p1 }
 0x12e   : > { %p841_p8 = pnand %p840_p3, %p836_p4 }
 0x130   : > { %844 = shalt.err (!%p841_p8)
}
 0x131   : > { %s916_s24 = smov 256   ;;  %s917_s21 = smov 16  }
 0x132   : > { %647 = dma.vmem_to_hbm [thread:$0]  (%p1038_p7), %s1082_s14, 512, %s1087_s30, %s462_s8, %s916_s24, %s916_s24, %s917_s21  }
 0x133 PF: > { %s493_s29 = sand.u32 1, %s883_s15   ;;  %p1153_p9 = scmp.ne.s32.totalorder %s1146_s26, 0 }
 0x134   : > { %p1154_p11 = scmp.ge.s32.totalorder %s903_s20, 2  ;;  %s494_s18 = scalar_lea.sflag [#allocation5], %s493_s29 }
 0x136   : > { %p661_p2 = pnand %p1154_p11, %p1153_p9 }
 0x138   : > { %p662_p13 = pneg %p661_p2 }
 0x13a   : > { %878 = dma.done.wait (%p662_p13), %s494_s18, 512  }
 0x13b   : > { %880 = vsyncadd (%p662_p13), %s494_s18, 4294966784  ;;  %s21_s20 = sadd.s32 1, %s903_s20   ;;  %s1155_s15 = smov %s887_s16 }
 0x13c   : > { %p18_p0 = scmp.ge.s32.totalorder %s21_s20, 4   ;;  %s1156_s16 = smov %s891_s17 }
 0x13d   : > { %s1157_s17 = smov %s1047_s9  ;;  %s1158_s18 = smov %s899_s19 }
 0x13e   : > { %s1159_s19 = smov %s1161_s28  ;;  %20 = sbr.rel (!%p18_p0) target bundleno = 7 (0x7), region = 102 }
 0x143   :  { %499 = vsyncpa [#allocation4], 1 }
 0x144   :  { %501 = vsyncpa [#allocation4 + $0x1], 1 }
 0x145   :  { %502 = vsyncpa [#allocation7], 1 }
 0x146   :  { %503 = vsyncpa [#allocation5], 1 }
 0x147   :  { %505 = vsyncpa [#allocation5 + $0x1], 1 }

</bundles_post_ra>
